<compile_context>
chip_gen: v7x
topology: tpu7x:2x2x1
jax: 0.10.0
libtpu: 0.0.40
codegen_flags: <defaults>
</compile_context>

<pallas_src>
import functools

import jax
import jax.numpy as jnp
import numpy as np
from jax.experimental import pallas as pl
from jax.experimental.pallas import tpu as pltpu

HID_PAD = 128  # fused (actor | critic) hidden width, lane-padded (2*hidden <= 128)


def _policy_fused_kernel(x_ref, w1_ref, b1_ref, w2_ref, b2_ref, w3_ref, b3_ref,
                         out_ref):
    """Fused actor+critic MLP: 3 bf16 MXU matmuls, f32 accumulation, narrow store."""
    x = x_ref[...]                                                    # (tb, S) bf16

    h = jnp.dot(x, w1_ref[...], preferred_element_type=jnp.float32) + b1_ref[...]
    h = jnp.maximum(h, 0.0)                                           # f32 VPU
    h = jnp.dot(h.astype(jnp.bfloat16), w2_ref[...],
                preferred_element_type=jnp.float32) + b2_ref[...]
    h = jnp.maximum(h, 0.0)
    h = jnp.dot(h.astype(jnp.bfloat16), w3_ref[...],
                preferred_element_type=jnp.float32) + b3_ref[...]     # (tb, head)

    # Narrow (tb, head<=8) bf16 store: ~32x less HBM writeback than the old
    # lane-padded f32 slab. tanh happens on the sliced mean in the JAX glue.
    out_ref[...] = h.astype(out_ref.dtype)


@functools.partial(jax.jit, static_argnames=("action_space", "tile_b"))
def policy_forward(x, packed, action_space, actor_logstd=1.0,
                   variance_multiplier=0.15, tile_b=4096):
    """Returns (action_mean, scale_tril, value).

    (mean, scale_tril) parameterize the MultivariateNormal the torch module
    would construct; value is the critic output."""
    batch, state_space = x.shape
    head = packed["w3"].shape[1]          # action_space + 1, padded to mult. of 8

    # ---- batch tiling -------------------------------------------------------
    tb = min(tile_b, batch)
    if batch >= 32:
        # Guarantee >= 2 grid blocks so the "parallel" axis can shard across
        # both v7x TensorCores (no effect on single-TC v5e/v6e).
        tb = min(tb, max(16, batch // 2))
    if tb < batch:
        tb = max(16, (tb // 16) * 16)     # bf16-friendly sublane multiple
    if tb >= batch:
        tb = batch                        # single full block (dims == array dims)
    num_blocks = pl.cdiv(batch, tb)

    # ---- operands -----------------------------------------------------------
    x_bf16 = x.astype(jnp.bfloat16)
    w1, b1 = packed["w1"], packed["b1"]
    w2, b2 = packed["w2"], packed["b2"]
    w3, b3 = packed["w3"], packed["b3"]

    # Weights/biases: single VMEM-resident copy for the whole grid (no
    # per-step pipelining / double buffering of ~70 KB of constants).
    resident = pl.BlockSpec(memory_space=pltpu.MemorySpace.VMEM)

    # ---- VMEM budget --------------------------------------------------------
    # Double-buffered x/out blocks (lane-padded to 128 in VMEM, bf16) plus a few
    # (tb, 128) f32 intermediates plus resident weights; 1.5x headroom, capped
    # below v7x's 64 MiB/TC physical VMEM.
    vmem_est = 2 * (2 * tb * 128 * 2) + 4 * (tb * 128 * 4) + (1 << 20)
    vmem_limit = int(min(56 * 2**20, max(32 * 2**20, (vmem_est * 3) // 2)))

    weight_bytes = sum(int(a.size) * a.dtype.itemsize
                       for a in (w1, b1, w2, b2, w3, b3))
    cost = pl.CostEstimate(
        flops=2 * batch * (state_space * HID_PAD + HID_PAD * HID_PAD
                           + HID_PAD * head),
        transcendentals=0,
        bytes_accessed=2 * batch * (state_space + head) + weight_bytes,
    )

    out = pl.pallas_call(
        _policy_fused_kernel,
        out_shape=jax.ShapeDtypeStruct((batch, head), jnp.bfloat16),
        grid=(num_blocks,),
        in_specs=[
            pl.BlockSpec((tb, state_space), lambda i: (i, 0)),  # x streams
            resident, resident,                                 # w1, b1
            resident, resident,                                 # w2, b2
            resident, resident,                                 # w3, b3
        ],
        out_specs=pl.BlockSpec((tb, head), lambda i: (i, 0)),
        compiler_params=pltpu.CompilerParams(
            dimension_semantics=("parallel",),
            vmem_limit_bytes=vmem_limit,
        ),
        cost_estimate=cost,
    )(x_bf16, w1, b1, w2, b2, w3, b3)

    # ---- thin JAX glue ------------------------------------------------------
    out_f32 = out.astype(jnp.float32)
    mean = jnp.tanh(out_f32[:, :action_space])          # tanh on A cols: free here
    value = out_f32[:, action_space:action_space + 1]

    scale = variance_multiplier * jnp.exp(actor_logstd)
    scale_tril = scale * jnp.eye(action_space, dtype=jnp.float32)
    return mean, scale_tril, value


def init_policy_params(key, state_space, action_space, hidden_size=32):
    """Mirror torch init: weight ~ N(0, 0.1), bias = 0.

    Weights stored as [in_features, out_features] (transposed vs. torch)."""
    ks = jax.random.split(key, 6)

    def w(k, shape):
        return 0.1 * jax.random.normal(k, shape, dtype=jnp.float32)

    def b(n):
        return jnp.zeros((1, n), dtype=jnp.float32)

    return {
        "w1a": w(ks[0], (state_space, hidden_size)), "b1a": b(hidden_size),
        "w2a": w(ks[1], (hidden_size, hidden_size)), "b2a": b(hidden_size),
        "w3a": w(ks[2], (hidden_size, action_space)), "b3a": b(action_space),
        "w1c": w(ks[3], (state_space, hidden_size)), "b1c": b(hidden_size),
        "w2c": w(ks[4], (hidden_size, hidden_size)), "b2c": b(hidden_size),
        "w3c": w(ks[5], (hidden_size, 1)), "b3c": b(1),
    }


def pack_policy_params(p, state_space, action_space, hidden_size=32):
    """Fuse actor+critic weights; hidden lane-padded to 128, head to mult. of 8.

    Weights are cast to bf16 (MXU-native, halves streamed bytes); biases stay
    f32 (tiny, VMEM-resident, added to the f32 accumulator)."""
    h = hidden_size
    head = int(np.ceil((action_space + 1) / 8)) * 8
    assert 2 * h <= HID_PAD
    assert action_space + 1 <= head

    w1 = jnp.zeros((state_space, HID_PAD), jnp.float32)
    w1 = w1.at[:, :h].set(p["w1a"]).at[:, h:2 * h].set(p["w1c"])
    b1 = jnp.zeros((1, HID_PAD), jnp.float32)
    b1 = b1.at[:, :h].set(p["b1a"]).at[:, h:2 * h].set(p["b1c"])

    w2 = jnp.zeros((HID_PAD, HID_PAD), jnp.float32)
    w2 = w2.at[:h, :h].set(p["w2a"]).at[h:2 * h, h:2 * h].set(p["w2c"])
    b2 = jnp.zeros((1, HID_PAD), jnp.float32)
    b2 = b2.at[:, :h].set(p["b2a"]).at[:, h:2 * h].set(p["b2c"])

    w3 = jnp.zeros((HID_PAD, head), jnp.float32)
    w3 = w3.at[:h, :action_space].set(p["w3a"])
    w3 = w3.at[h:2 * h, action_space:action_space + 1].set(p["w3c"])
    b3 = jnp.zeros((1, head), jnp.float32)
    b3 = b3.at[:, :action_space].set(p["b3a"])
    b3 = b3.at[:, action_space:action_space + 1].set(p["b3c"])

    return {"w1": w1.astype(jnp.bfloat16), "b1": b1,
            "w2": w2.astype(jnp.bfloat16), "b2": b2,
            "w3": w3.astype(jnp.bfloat16), "b3": b3}


if __name__ == "__main__":
    state_space = 8
    action_space = 4
    hidden_size = 32
    batch = 64        # small test batch; default tiling gives 2 grid blocks

    key = jax.random.PRNGKey(0)
    pkey, xkey = jax.random.split(key)

    params = init_policy_params(pkey, state_space, action_space, hidden_size)
    packed = pack_policy_params(params, state_space, action_space, hidden_size)
    x = jax.random.normal(xkey, (batch, state_space), dtype=jnp.float32)

    mean, scale_tril, value = policy_forward(
        x, packed, action_space, actor_logstd=1.0, variance_multiplier=0.15,
    )
    jax.block_until_ready((mean, scale_tril, value))

    # Pure-JAX f32 reference (same math as the torch module, no Pallas).
    def ref_forward(x, p):
        h_a = jnp.maximum(x @ p["w1a"] + p["b1a"], 0.0)
        h_a = jnp.maximum(h_a @ p["w2a"] + p["b2a"], 0.0)
        h_a = h_a @ p["w3a"] + p["b3a"]
        h_c = jnp.maximum(x @ p["w1c"] + p["b1c"], 0.0)
        h_c = jnp.maximum(h_c @ p["w2c"] + p["b2c"], 0.0)
        h_c = h_c @ p["w3c"] + p["b3c"]
        return jnp.tanh(h_a), h_c

    ref_mean, ref_value = ref_forward(x, params)
    # bf16 streaming / bf16 output => looser tolerance than the old f32 path.
    np.testing.assert_allclose(np.asarray(mean), np.asarray(ref_mean),
                               rtol=2e-2, atol=2e-2)
    np.testing.assert_allclose(np.asarray(value), np.asarray(ref_value),
                               rtol=2e-2, atol=2e-2)
    expected_scale = 0.15 * np.exp(1.0)
    np.testing.assert_allclose(
        np.asarray(scale_tril), expected_scale * np.eye(action_space), rtol=1e-6
    )

    print("KERNEL_OK")
</pallas_src>

<mosaic_0001>
module attributes {stable_mosaic.version = 11 : i64} {
  func.func @_policy_fused_kernel(%arg0: i32, %arg1: memref<32x8xbf16, #tpu.memory_space<vmem>>, %arg2: memref<8x128xbf16, #tpu.memory_space<vmem>>, %arg3: memref<1x128xf32, #tpu.memory_space<vmem>>, %arg4: memref<128x128xbf16, #tpu.memory_space<vmem>>, %arg5: memref<1x128xf32, #tpu.memory_space<vmem>>, %arg6: memref<128x8xbf16, #tpu.memory_space<vmem>>, %arg7: memref<1x8xf32, #tpu.memory_space<vmem>>, %arg8: memref<32x8xbf16, #tpu.memory_space<vmem>>) attributes {dimension_semantics = [#tpu.dimension_semantics<parallel>], iteration_bounds = array<i64: 2>, scalar_prefetch = 0 : i64, scratch_operands = 0 : i64, tpu.core_type = #tpu.core_type<tc>, window_params = [{transform_indices = @transform_0, window_bounds = array<i64: 32, 8>}, {pipeline_mode = #tpu.pipeline_mode<synchronous>, transform_indices = @transform_1, window_bounds = array<i64: 8, 128>}, {pipeline_mode = #tpu.pipeline_mode<synchronous>, transform_indices = @transform_2, window_bounds = array<i64: 1, 128>}, {pipeline_mode = #tpu.pipeline_mode<synchronous>, transform_indices = @transform_3, window_bounds = array<i64: 128, 128>}, {pipeline_mode = #tpu.pipeline_mode<synchronous>, transform_indices = @transform_4, window_bounds = array<i64: 1, 128>}, {pipeline_mode = #tpu.pipeline_mode<synchronous>, transform_indices = @transform_5, window_bounds = array<i64: 128, 8>}, {pipeline_mode = #tpu.pipeline_mode<synchronous>, transform_indices = @transform_6, window_bounds = array<i64: 1, 8>}, {transform_indices = @transform_7, window_bounds = array<i64: 32, 8>}]} {
    %c0 = arith.constant 0 : index
    %c0_0 = arith.constant 0 : index
    %0 = vector.load %arg1[%c0, %c0_0] : memref<32x8xbf16, #tpu.memory_space<vmem>>, vector<32x8xbf16>
    %c0_1 = arith.constant 0 : index
    %c0_2 = arith.constant 0 : index
    %1 = vector.load %arg2[%c0_1, %c0_2] : memref<8x128xbf16, #tpu.memory_space<vmem>>, vector<8x128xbf16>
    %cst = arith.constant dense<0.000000e+00> : vector<32x128xf32>
    %2 = tpu.matmul %0, %1, %cst {dimension_numbers = #tpu.dot_dimension_numbers<[1], [0], [0], [1], [0, 0, 1, 1], [], []>} : vector<32x8xbf16>, vector<8x128xbf16>, vector<32x128xf32> -> vector<32x128xf32>
    %c0_3 = arith.constant 0 : index
    %c0_4 = arith.constant 0 : index
    %3 = vector.load %arg3[%c0_3, %c0_4] : memref<1x128xf32, #tpu.memory_space<vmem>>, vector<1x128xf32>
    %4 = vector.broadcast %3 : vector<1x128xf32> to vector<32x128xf32>
    %5 = arith.addf %2, %4 : vector<32x128xf32>
    %cst_5 = arith.constant 0.000000e+00 : f32
    %6 = vector.broadcast %cst_5 : f32 to vector<32x128xf32>
    %7 = arith.maximumf %5, %6 : vector<32x128xf32>
    %8 = arith.truncf %7 : vector<32x128xf32> to vector<32x128xbf16>
    %c0_6 = arith.constant 0 : index
    %c0_7 = arith.constant 0 : index
    %9 = vector.load %arg4[%c0_6, %c0_7] : memref<128x128xbf16, #tpu.memory_space<vmem>>, vector<128x128xbf16>
    %cst_8 = arith.constant dense<0.000000e+00> : vector<32x128xf32>
    %10 = tpu.matmul %8, %9, %cst_8 {dimension_numbers = #tpu.dot_dimension_numbers<[1], [0], [0], [1], [0, 0, 1, 1], [], []>} : vector<32x128xbf16>, vector<128x128xbf16>, vector<32x128xf32> -> vector<32x128xf32>
    %c0_9 = arith.constant 0 : index
    %c0_10 = arith.constant 0 : index
    %11 = vector.load %arg5[%c0_9, %c0_10] : memref<1x128xf32, #tpu.memory_space<vmem>>, vector<1x128xf32>
    %12 = vector.broadcast %11 : vector<1x128xf32> to vector<32x128xf32>
    %13 = arith.addf %10, %12 : vector<32x128xf32>
    %cst_11 = arith.constant 0.000000e+00 : f32
    %14 = vector.broadcast %cst_11 : f32 to vector<32x128xf32>
    %15 = arith.maximumf %13, %14 : vector<32x128xf32>
    %16 = arith.truncf %15 : vector<32x128xf32> to vector<32x128xbf16>
    %c0_12 = arith.constant 0 : index
    %c0_13 = arith.constant 0 : index
    %17 = vector.load %arg6[%c0_12, %c0_13] : memref<128x8xbf16, #tpu.memory_space<vmem>>, vector<128x8xbf16>
    %cst_14 = arith.constant dense<0.000000e+00> : vector<32x8xf32>
    %18 = tpu.matmul %16, %17, %cst_14 {dimension_numbers = #tpu.dot_dimension_numbers<[1], [0], [0], [1], [0, 0, 1, 1], [], []>} : vector<32x128xbf16>, vector<128x8xbf16>, vector<32x8xf32> -> vector<32x8xf32>
    %c0_15 = arith.constant 0 : index
    %c0_16 = arith.constant 0 : index
    %19 = vector.load %arg7[%c0_15, %c0_16] : memref<1x8xf32, #tpu.memory_space<vmem>>, vector<1x8xf32>
    %20 = vector.broadcast %19 : vector<1x8xf32> to vector<32x8xf32>
    %21 = arith.addf %18, %20 : vector<32x8xf32>
    %22 = arith.truncf %21 : vector<32x8xf32> to vector<32x8xbf16>
    %c0_17 = arith.constant 0 : index
    %c0_18 = arith.constant 0 : index
    %23 = vector.load %arg8[%c0_17, %c0_18] : memref<32x8xbf16, #tpu.memory_space<vmem>>, vector<32x8xbf16>
    tpu.vector_store %arg8[%c0_17, %c0_18], %22 {strides = array<i32>} : memref<32x8xbf16, #tpu.memory_space<vmem>>, vector<32x8xbf16>,
    return
  }
  func.func @transform_0(%arg0: i32) -> (i32, i32) {
    %c0_i32 = arith.constant 0 : i32
    %c0_i32_0 = arith.constant 0 : i32
    return %arg0, %c0_i32 : i32, i32
  }
  func.func @transform_1(%arg0: i32) -> (i32, i32) {
    %c0_i32 = arith.constant 0 : i32
    %c0_i32_0 = arith.constant 0 : i32
    %c0_i32_1 = arith.constant 0 : i32
    return %c0_i32, %c0_i32_0 : i32, i32
  }
  func.func @transform_2(%arg0: i32) -> (i32, i32) {
    %c0_i32 = arith.constant 0 : i32
    %c0_i32_0 = arith.constant 0 : i32
    %c0_i32_1 = arith.constant 0 : i32
    return %c0_i32, %c0_i32_0 : i32, i32
  }
  func.func @transform_3(%arg0: i32) -> (i32, i32) {
    %c0_i32 = arith.constant 0 : i32
    %c0_i32_0 = arith.constant 0 : i32
    %c0_i32_1 = arith.constant 0 : i32
    return %c0_i32, %c0_i32_0 : i32, i32
  }
  func.func @transform_4(%arg0: i32) -> (i32, i32) {
    %c0_i32 = arith.constant 0 : i32
    %c0_i32_0 = arith.constant 0 : i32
    %c0_i32_1 = arith.constant 0 : i32
    return %c0_i32, %c0_i32_0 : i32, i32
  }
  func.func @transform_5(%arg0: i32) -> (i32, i32) {
    %c0_i32 = arith.constant 0 : i32
    %c0_i32_0 = arith.constant 0 : i32
    %c0_i32_1 = arith.constant 0 : i32
    return %c0_i32, %c0_i32_0 : i32, i32
  }
  func.func @transform_6(%arg0: i32) -> (i32, i32) {
    %c0_i32 = arith.constant 0 : i32
    %c0_i32_0 = arith.constant 0 : i32
    %c0_i32_1 = arith.constant 0 : i32
    return %c0_i32, %c0_i32_0 : i32, i32
  }
  func.func @transform_7(%arg0: i32) -> (i32, i32) {
    %c0_i32 = arith.constant 0 : i32
    %c0_i32_0 = arith.constant 0 : i32
    return %arg0, %c0_i32 : i32, i32
  }
}

</mosaic_0001>

<bundles_post_ra>
// kernel: policy_forward.1
= control target key start
LH: loop header
LB: loop body
LE: loop exit
PB: predicated region body
PF: predicated region fallthrough
CT: control target
= control target key end

     0   :  { %s880_s24 = smov 0   ;;  %s964_s0 = inlined_call_operand.vmem [shape: bf16[64,8], index: 0, kind: input, shape index: {}]   ;;  %s965_s1 = inlined_call_operand.vmem [shape: bf16[8,128], index: 1, kind: input, shape index: {}]   ;;  %s966_s2 = inlined_call_operand.vmem [shape: f32[1,128], index: 2, kind: input, shape index: {}]   ;;  %s967_s3 = inlined_call_operand.vmem [shape: bf16[128,128], index: 3, kind: input, shape index: {}]   ;;  %s968_s4 = inlined_call_operand.vmem [shape: f32[1,128], index: 4, kind: input, shape index: {}]   ;;  %s969_s5 = inlined_call_operand.vmem [shape: bf16[128,8], index: 5, kind: input, shape index: {}]   ;;  %s970_s6 = inlined_call_operand.vmem [shape: f32[1,8], index: 6, kind: input, shape index: {}]   ;;  %s971_s7 = inlined_call_operand.vmem [shape: bf16[64,8], index: 7, kind: output, shape index: {}]  }
   0x1 LB: > { %s694_s25 = sadd.s32 4294967295, %s838_s24   ;;  %p698_p0 = scmp.ge.s32.totalorder %s838_s24, 1  ;;  %s838_s24 = sphi %s880_s24, %s17_s24  }
   0x2   : > { %p238_p1 = scmp.lt.s32.totalorder %s838_s24, 3 }
   0x4   : > { %p239_p2 = pnand %p698_p0, %p238_p1 }
   0x5   : > { %v287_v0 = vld [vmem:[%s965_s1] sm:$0xf] (!%p239_p2)  ;;  %vm312_vm0 = vcmask (!%p239_p2), 1043456   ;;  %s699_s28 = sshll.u32 (!%p239_p2), %s694_s25, 2  ;;  %v817_v3 = vld [vmem:[%s967_s3 + $0x8] sm:$0xff] (!%p239_p2)   ;;  %v818_v4 = vld [vmem:[%s967_s3 + $0x10] sm:$0xff] (!%p239_p2)  }
   0x6   : > { %242 = sbr.rel (%p239_p2) target bundleno = 682 (0x2aa), region = 48  ;;  %v816_v1 = vld [vmem:[%s967_s3] sm:$0xff] (!%p239_p2)   ;;  %805 = vmatprep.subr.msk.bf16.mxu0 (!%p239_p2), %vm312_vm0, %v287_v0  ;;  %v314_v2 = vsel (!%p239_p2), %vm312_vm0, %v287_v0, 0  ;;  %p271_p3 = scmp.lt.s32.totalorder (!%p239_p2), %s699_s28, 7  ;;  %vm305_vm1 = vcmask (!%p239_p2), 64512   ;;  %v819_v5 = vld [vmem:[%s967_s3 + $0x18] sm:$0xff] (!%p239_p2)  }
   0x7   : > { %760 = vmatpush3.bf16.msra.mxu0 (!%p239_p2), %v314_v2  ;;  %765 = vmatprep.subr.bf16.mxu1 (!%p239_p2), %v816_v1  ;;  %v820_v8 = vld [vmem:[%s967_s3 + $0x20] sm:$0xff] (!%p239_p2)   ;;  %v821_v9 = vld [vmem:[%s967_s3 + $0x28] sm:$0xff] (!%p239_p2)   ;;  %v822_v10 = vld [vmem:[%s967_s3 + $0x30] sm:$0xff] (!%p239_p2)   ;;  %vm633_vm2 = vcmask (!%p239_p2), 60416  }
   0x8   : > { %766 = vmatpush3.bf16.msra.mxu1 (!%p239_p2), %v816_v1  ;;  %v823_v11 = vld [vmem:[%s967_s3 + $0x38] sm:$0xff] (!%p239_p2)   ;;  %v824_v12 = vld [vmem:[%s969_s5] sm:$0xff] (!%p239_p2)   ;;  %v825_v13 = vld [vmem:[%s969_s5 + $0x8] sm:$0xff] (!%p239_p2)  }
   0x9   : > { %767 = vmatprep.subr.bf16.mxu1 (!%p239_p2), %v817_v3  ;;  %785 = vmatprep.subr.bf16.mxu0 (!%p239_p2), %v824_v12  ;;  %v826_v14 = vld [vmem:[%s969_s5 + $0x10] sm:$0xff] (!%p239_p2)   ;;  %v827_v15 = vld [vmem:[%s969_s5 + $0x18] sm:$0xff] (!%p239_p2)   ;;  %v828_v16 = vld [vmem:[%s969_s5 + $0x20] sm:$0xff] (!%p239_p2)  }
   0xa   : > { %v829_v17 = vld [vmem:[%s969_s5 + $0x28] sm:$0xff] (!%p239_p2)   ;;  %v703_v18 = vld [vmem:[%s966_s2] ss:$0 sm:$0xff] (!%p239_p2)  ;;  %v830_v33 = vld [vmem:[%s969_s5 + $0x30] sm:$0xff] (!%p239_p2)  }
   0xb   : > { %v831_v34 = vld [vmem:[%s969_s5 + $0x38] sm:$0xff] (!%p239_p2)   ;;  %v708_v35 = vld [vmem:[%s968_s4] ss:$0 sm:$0xff] (!%p239_p2) }
   0xc   : > { %768 = vmatpush3.bf16.msra.mxu1 (!%p239_p2), %v817_v3  ;;  %v717_v50 = vld [vmem:[%s970_s6] ss:$0 sm:$0xff] (!%p239_p2) }
   0xd   : > { %s973_s28 = smov (!%p271_p3, %s699_s28), 7  ;;  %769 = vmatprep.subr.bf16.mxu1 %v818_v4 }
   0xe   : > { %s700_s12 = sshll.u32 %s973_s28, 2 }
   0xf   : > { %s274_s15 = scalar_lea.vmem %s964_s0, %s700_s12  ;;  %s280_s9 = scalar_lea.vmem %s971_s7, %s700_s12 }
  0x10   : > { %v814_v6 = vld [vmem:[%s274_s15] sm:$0xff]   ;;  %v815_v7 = vld [vmem:[%s274_s15 + $0x8] sm:$0xff]   ;;  %770 = vmatpush3.bf16.msra.mxu1 %v818_v4 }
  0x11   : > { %761 = vmatprep.mubr.msk.bf16.mxu0 %vm305_vm1, %v814_v6  ;;  %771 = vmatprep.subr.bf16.mxu1 %v819_v5 }
  0x12   : > { %762 = vmatmul.mubr.msk.bf16.vlgmr.msra.gmra.mrb[0].mxu0 %vm305_vm1, %v815_v7 }
  0x13   : > { %786 = vmatpush3.bf16.msra.mxu0 %v824_v12 }
  0x14   : > { %772 = vmatpush3.bf16.msra.mxu1 %v819_v5  ;;  %787 = vmatprep.subr.bf16.mxu0 %v825_v13 }
  0x15   : > { %773 = vmatprep.subr.bf16.mxu1 %v820_v8 }
  0x17   : > { %788 = vmatpush3.bf16.msra.mxu0 %v825_v13 }
  0x18   : > { %774 = vmatpush3.bf16.msra.mxu1 %v820_v8  ;;  %789 = vmatprep.subr.bf16.mxu0 %v826_v14 }
  0x19   : > { %775 = vmatprep.subr.bf16.mxu1 %v821_v9 }
  0x1b   : > { %790 = vmatpush3.bf16.msra.mxu0 %v826_v14 }
  0x1c   : > { %776 = vmatpush3.bf16.msra.mxu1 %v821_v9  ;;  %791 = vmatprep.subr.bf16.mxu0 %v827_v15 }
  0x1d   : > { %777 = vmatprep.subr.bf16.mxu1 %v822_v10 }
  0x1f   : > { %792 = vmatpush3.bf16.msra.mxu0 %v827_v15 }
  0x20   : > { %778 = vmatpush3.bf16.msra.mxu1 %v822_v10  ;;  %793 = vmatprep.subr.bf16.mxu0 %v828_v16 }
  0x21   : > { %779 = vmatprep.subr.bf16.mxu1 %v823_v11 }
  0x23   : > { %794 = vmatpush3.bf16.msra.mxu0 %v828_v16 }
  0x24   : > { %780 = vmatpush3.bf16.msra.mxu1 %v823_v11  ;;  %795 = vmatprep.subr.bf16.mxu0 %v829_v17 }
  0x27   : > { %796 = vmatpush3.bf16.msra.mxu0 %v829_v17 }
  0x28   : > { %797 = vmatprep.subr.bf16.mxu0 %v830_v33 }
  0x2b   : > { %798 = vmatpush3.bf16.msra.mxu0 %v830_v33 }
  0x2c   : > { %799 = vmatprep.subr.bf16.mxu0 %v831_v34 }
  0x2f   : > { %800 = vmatpush3.bf16.msra.mxu0 %v831_v34 }
  0xe5   : > { %v763_v19 = vpop.f32.mrb[0].mxu0 }
  0xe6   : > { %v359_v20 = vadd.f32 %v763_v19, %v703_v18  ;;  %v350_v21 = vpop.f32.mrb[1].mxu0 }
  0xe7   : > { %v351_v22 = vadd.f32 %v703_v18, %v350_v21  ;;  %v764_v23 = vpop.f32.mrb[2].mxu0 }
  0xe8   : > { %v362_v24 = vadd.f32 %v764_v23, %v703_v18  ;;  %v353_v25 = vpop.f32.mrb[3].mxu0  ;;  %v367_v27 = vmax.f32 %v359_v20, 0.0 }
  0xe9   : > { %v354_v26 = vadd.f32 %v703_v18, %v353_v25  ;;  %v365_v29 = vmax.f32 %v351_v22, 0.0 }
  0xea   : > { %v368_v28 = vmax.f32 %v362_v24, 0.0 }
  0xeb   : > { %v366_v30 = vmax.f32 %v354_v26, 0.0 }
  0xec   : > { %v370_v31 = vpack.c.bf16 %v368_v28, %v367_v27 }
  0xed   : > { %v369_v32 = vpack.c.bf16 %v366_v30, %v365_v29 }
  0xef   : > { %781 = vmatprep.mubr.bf16.mxu1 %v369_v32 }
  0xf0   : > { %782 = vmatmul.mubr.bf16.vlgmr.msra.gmra.mrb[0].mxu1 %v370_v31 }
 0x1c3   : > { %v783_v36 = vpop.f32.mrb[0].mxu1 }
 0x1c4   : > { %v485_v37 = vadd.f32 %v783_v36, %v708_v35  ;;  %v476_v38 = vpop.f32.mrb[1].mxu1 }
 0x1c5   : > { %v477_v39 = vadd.f32 %v708_v35, %v476_v38  ;;  %v784_v40 = vpop.f32.mrb[2].mxu1 }
 0x1c6   : > { %v488_v41 = vadd.f32 %v784_v40, %v708_v35  ;;  %v479_v42 = vpop.f32.mrb[3].mxu1  ;;  %v493_v44 = vmax.f32 %v485_v37, 0.0 }
 0x1c7   : > { %v480_v43 = vadd.f32 %v708_v35, %v479_v42  ;;  %v491_v46 = vmax.f32 %v477_v39, 0.0 }
 0x1c8   : > { %v494_v45 = vmax.f32 %v488_v41, 0.0 }
 0x1c9   : > { %v492_v47 = vmax.f32 %v480_v43, 0.0 }
 0x1ca   : > { %v496_v48 = vpack.c.bf16 %v494_v45, %v493_v44 }
 0x1cb   : > { %v495_v49 = vpack.c.bf16 %v492_v47, %v491_v46 }
 0x1cd   : > { %801 = vmatprep.mubr.bf16.mxu0 %v495_v49 }
 0x1ce   : > { %802 = vmatmul.mubr.bf16.vlgmr.msra.gmra.mrb[4].mxu0 %v496_v48 }
 0x2a1   : > { %v803_v51 = vpop.f32.mrb[4].mxu0 }
 0x2a2   : > { %v602_v52 = vpop.f32.mrb[5].mxu0  ;;  %v611_v55 = vadd.f32 %v803_v51, %v717_v50 }
 0x2a3   : > { %v603_v53 = vadd.f32 %v717_v50, %v602_v52  ;;  %v804_v54 = vpop.f32.mrb[6].mxu0 }
 0x2a4   : > { %v605_v56 = vpop.f32.mrb[7].mxu0  ;;  %v614_v58 = vadd.f32 %v804_v54, %v717_v50  ;;  %v734_v61 = vpack.c.bf16 %v611_v55, %v611_v55 }
 0x2a5   : > { %v732_v57 = vpack.c.bf16 %v603_v53, %v603_v53  ;;  %v606_v59 = vadd.f32 %v717_v50, %v605_v56 }
 0x2a6   : > { %v735_v62 = vpack.c.bf16 %v614_v58, %v614_v58  ;;  %636 = vst.msk [vmem:[%s280_s9 + $0x8] sm:$0xf] %vm633_vm2, %v734_v61 }
 0x2a7   : > { %634 = vst.msk [vmem:[%s280_s9] sm:$0xf] %vm633_vm2, %v732_v57  ;;  %v733_v60 = vpack.c.bf16 %v606_v59, %v606_v59 }
 0x2a8   : > { %637 = vst.msk [vmem:[%s280_s9 + $0xc] sm:$0xf] %vm633_vm2, %v735_v62 }
 0x2a9   : > { %635 = vst.msk [vmem:[%s280_s9 + $0x4] sm:$0xf] %vm633_vm2, %v733_v60 }
 0x2aa PF: > { %s17_s24 = sadd.s32 1, %s838_s24  }
 0x2ab   : > { %p14_p4 = scmp.ge.s32.totalorder %s17_s24, 4  }
 0x2ad   :  { %16 = sbr.rel (!%p14_p4) target bundleno = 1 (0x1), region = 78 }

</bundles_post_ra>
